<compile_context>
chip_gen: v7x
topology: tpu7x:2x2x1
jax: 0.10.0
libtpu: 0.0.40
codegen_flags: <defaults>
</compile_context>

<pallas_src>
import functools

import jax
import jax.numpy as jnp
from jax.experimental import pallas as pl
from jax.experimental.pallas import tpu as pltpu


def logreg_kernel(x_ref, w_ref, b_ref, o_ref):
    # x_ref: (TB, D) VMEM tile (pipelined), w_ref: (1, D) VMEM (grid-resident),
    # b_ref: (1, 1) SMEM scalar, o_ref: (TB, 1) VMEM.
    x = x_ref[...]
    w = w_ref[...]
    b = b_ref[0, 0]

    # VPU multiply + XLU lane reduce; no MXU, no in-kernel transpose.
    logits = jnp.sum(x * w, axis=-1, keepdims=True) + b          # (TB, 1) f32

    # Numerically stable sigmoid: z = exp(-|x|) (EUP), divide via pl.reciprocal.
    #   x >= 0: 1 / (1 + e^-x)     x < 0: e^x / (1 + e^x)
    z = jnp.exp(-jnp.abs(logits))
    num = jnp.where(logits >= 0, 1.0, z)
    o_ref[...] = (num * pl.reciprocal(1.0 + z)).astype(o_ref.dtype)


def _round_up(n, m):
    return ((n + m - 1) // m) * m


def _pick_block_rows(batch, feat, dtype_bytes=4, vmem_budget_bytes=8 << 20):
    """Largest batch tile whose double-buffered x DMA fits a conservative VMEM budget."""
    rows = vmem_budget_bytes // (2 * max(feat, 1) * dtype_bytes)
    rows = max(8, min(rows, 2048))
    rows = (rows // 8) * 8                 # sublane multiple
    if batch <= rows:
        return _round_up(batch, 8)
    return rows


@functools.partial(jax.jit, static_argnames=("block_rows",))
def logistic_regression_forward(x, w, b, *, block_rows=None):
    """x: (B, D) f32, w: (1, D) f32, b: (1,) f32 -> (B, 1) f32 = sigmoid(x @ w.T + b)."""
    B, D = x.shape
    tb = block_rows if block_rows is not None else _pick_block_rows(B, D)
    bp = _round_up(max(B, tb), tb)
    if bp != B:
        # Pad batch so it tiles evenly; padded rows are sliced off below.
        x = jnp.pad(x, ((0, bp - B), (0, 0)))

    b2 = b.reshape(1, 1).astype(jnp.float32)

    out = pl.pallas_call(
        logreg_kernel,
        out_shape=jax.ShapeDtypeStruct((bp, 1), jnp.float32),
        grid=(bp // tb,),
        in_specs=[
            pl.BlockSpec((tb, D), lambda i: (i, 0)),             # x: pipelined batch tiles
            pl.BlockSpec((1, D), lambda i: (0, 0)),              # w: resident in VMEM
            pl.BlockSpec(memory_space=pltpu.MemorySpace.SMEM),   # bias: scalar in SMEM
        ],
        out_specs=pl.BlockSpec((tb, 1), lambda i: (i, 0)),
        compiler_params=pltpu.CompilerParams(
            dimension_semantics=("parallel",),   # independent batch tiles (v7x 2 TCs)
        ),
    )(x, w, b2)
    return out[:B]


if __name__ == "__main__":
    key = jax.random.PRNGKey(0)
    kx, kw, kb, kx2 = jax.random.split(key, 4)

    B, D = 8, 32  # small batch, input_dim=32 (matches nn.Linear(input_dim, 1))

    x = jax.random.normal(kx, (B, D), dtype=jnp.float32)

    # Deterministic nn.Linear-style init: U(-1/sqrt(D), 1/sqrt(D))
    bound = 1.0 / jnp.sqrt(jnp.float32(D))
    w = jax.random.uniform(kw, (1, D), dtype=jnp.float32, minval=-bound, maxval=bound)
    b = jax.random.uniform(kb, (1,), dtype=jnp.float32, minval=-bound, maxval=bound)

    out = logistic_regression_forward(x, w, b)
    jax.block_until_ready(out)
    ref = jax.nn.sigmoid(x @ w.T + b)
    assert out.shape == (B, 1)
    assert jnp.allclose(out, ref, atol=1e-5, rtol=1e-5)

    # Exercise the multi-tile pipelined path (non-divisible batch -> padding).
    B2 = 300
    x2 = jax.random.normal(kx2, (B2, D), dtype=jnp.float32)
    out2 = logistic_regression_forward(x2, w, b, block_rows=128)
    jax.block_until_ready(out2)
    ref2 = jax.nn.sigmoid(x2 @ w.T + b)
    assert out2.shape == (B2, 1)
    assert jnp.allclose(out2, ref2, atol=1e-5, rtol=1e-5)

    print("KERNEL_OK")
</pallas_src>

<mosaic_0001>
module attributes {stable_mosaic.version = 11 : i64} {
  func.func @logreg_kernel(%arg0: i32, %arg1: memref<8x32xf32, #tpu.memory_space<vmem>>, %arg2: memref<1x32xf32, #tpu.memory_space<vmem>>, %arg3: memref<1x1xf32, #tpu.memory_space<smem>>, %arg4: memref<8x1xf32, #tpu.memory_space<vmem>>) attributes {dimension_semantics = [#tpu.dimension_semantics<parallel>], iteration_bounds = array<i64: 1>, scalar_prefetch = 0 : i64, scratch_operands = 0 : i64, tpu.core_type = #tpu.core_type<tc>, window_params = [{transform_indices = @transform_0, window_bounds = array<i64: 8, 32>}, {pipeline_mode = #tpu.pipeline_mode<synchronous>, transform_indices = @transform_1, window_bounds = array<i64: 1, 32>}, {transform_indices = @transform_2, window_bounds = array<i64: 1, 1>}, {transform_indices = @transform_3, window_bounds = array<i64: 8, 1>}]} {
    %c0 = arith.constant 0 : index
    %c0_0 = arith.constant 0 : index
    %0 = vector.load %arg1[%c0, %c0_0] : memref<8x32xf32, #tpu.memory_space<vmem>>, vector<8x32xf32>
    %c0_1 = arith.constant 0 : index
    %c0_2 = arith.constant 0 : index
    %1 = vector.load %arg2[%c0_1, %c0_2] : memref<1x32xf32, #tpu.memory_space<vmem>>, vector<1x32xf32>
    %c0_3 = arith.constant 0 : index
    %c0_4 = arith.constant 0 : index
    %2 = memref.load %arg3[%c0_3, %c0_4] : memref<1x1xf32, #tpu.memory_space<smem>>
    %3 = vector.broadcast %1 : vector<1x32xf32> to vector<8x32xf32>
    %4 = arith.mulf %0, %3 : vector<8x32xf32>
    %cst = arith.constant dense<0.000000e+00> : vector<8xf32>
    %5 = vector.multi_reduction <add>, %4, %cst [1] : vector<8x32xf32> to vector<8xf32>
    %6 = vector.shape_cast %5 : vector<8xf32> to vector<8x1xf32>
    %7 = vector.broadcast %2 : f32 to vector<8x1xf32>
    %8 = arith.addf %6, %7 : vector<8x1xf32>
    %9 = math.absf %8 : vector<8x1xf32>
    %cst_5 = arith.constant 0.000000e+00 : f32
    %10 = vector.broadcast %cst_5 : f32 to vector<8x1xf32>
    %11 = arith.subf %10, %9 : vector<8x1xf32>
    %12 = math.exp %11 : vector<8x1xf32>
    %cst_6 = arith.constant 0.000000e+00 : f32
    %13 = vector.broadcast %cst_6 : f32 to vector<8x1xf32>
    %14 = arith.cmpf oge, %8, %13 : vector<8x1xf32>
    %cst_7 = arith.constant 1.000000e+00 : f32
    %15 = vector.broadcast %cst_7 : f32 to vector<8x1xf32>
    %16 = arith.select %14, %15, %12 : vector<8x1xi1>, vector<8x1xf32>
    %cst_8 = arith.constant 1.000000e+00 : f32
    %17 = vector.broadcast %cst_8 : f32 to vector<8x1xf32>
    %18 = arith.addf %17, %12 : vector<8x1xf32>
    %19 = tpu.reciprocal %18 : vector<8x1xf32> -> vector<8x1xf32>
    %20 = arith.mulf %16, %19 : vector<8x1xf32>
    %c0_9 = arith.constant 0 : index
    %c0_10 = arith.constant 0 : index
    %21 = vector.load %arg4[%c0_9, %c0_10] : memref<8x1xf32, #tpu.memory_space<vmem>>, vector<8x1xf32>
    tpu.vector_store %arg4[%c0_9, %c0_10], %20 {strides = array<i32>} : memref<8x1xf32, #tpu.memory_space<vmem>>, vector<8x1xf32>,
    return
  }
  func.func @transform_0(%arg0: i32) -> (i32, i32) {
    %c0_i32 = arith.constant 0 : i32
    %c0_i32_0 = arith.constant 0 : i32
    return %arg0, %c0_i32 : i32, i32
  }
  func.func @transform_1(%arg0: i32) -> (i32, i32) {
    %c0_i32 = arith.constant 0 : i32
    %c0_i32_0 = arith.constant 0 : i32
    %c0_i32_1 = arith.constant 0 : i32
    return %c0_i32, %c0_i32_0 : i32, i32
  }
  func.func @transform_2(%arg0: i32) -> (i32, i32) {
    %c0_i32 = arith.constant 0 : i32
    %c0_i32_0 = arith.constant 0 : i32
    %c0_i32_1 = arith.constant 0 : i32
    return %c0_i32, %c0_i32_0 : i32, i32
  }
  func.func @transform_3(%arg0: i32) -> (i32, i32) {
    %c0_i32 = arith.constant 0 : i32
    %c0_i32_0 = arith.constant 0 : i32
    return %arg0, %c0_i32 : i32, i32
  }
}

</mosaic_0001>

<bundles_post_ra>
// kernel: logistic_regression_forward.1
= control target key start
LH: loop header
LB: loop body
LE: loop exit
PB: predicated region body
PF: predicated region fallthrough
CT: control target
= control target key end

     0   :  { %9 = vsyncpa [#allocation4], 0  ;;  %s89_s12 = smov [#allocation3]   ;;  %s131_s0 = inlined_call_operand.hbm [shape: f32[8,32], index: 0, kind: input, shape index: {}]   ;;  %s132_s1 = inlined_call_operand.vmem [shape: f32[1,32], index: 1, kind: input, shape index: {}]   ;;  %s133_s2 = inlined_call_operand.<no memory space> [shape: f32[1,1], index: 2, kind: input, shape index: {}]   ;;  %s134_s3 = inlined_call_operand.vmem [shape: f32[8,1], index: 3, kind: output, shape index: {}]  }
   0x1   :  { %s16_s13 = sshll.u32 %s89_s12, 4  ;;  %s65_s16 = scalar_lea.hbm %s131_s0, 128  ;;  %s17_s13 = int_to_ptr.vmem [resolvable:$true] %s16_s13 }
   0x2   :  { %p66_p0 = scmp.ne.s32.totalorder %s131_s0, %s65_s16  ;;  %p69_p1 = scmp.lt.u32.totalorder %s65_s16, %s131_s0 }
   0x4   :  { %p71_p2 = pnand %p69_p1, %p66_p0 }
   0x6   :  { %74 = shalt.err (!%p71_p2)
}
   0x7   :  { %s75_s21 = scalar_lea.vmem %s17_s13, 128  ;;  %p80_p4 = scmp.lt.s32.totalorder %s17_s13, %s17_s13 }
   0x8   :  { %p76_p3 = scmp.ne.s32.totalorder %s17_s13, %s75_s21  ;;  %p81_p5 = scmp.lt.s32.totalorder %s75_s21, %s75_s21 }
   0xa   :  { %p82_p6 = por %p81_p5, %p80_p4 }
   0xc   :  { %p83_p7 = pnand %p82_p6, %p76_p3 }
   0xe   :  { %86 = shalt.err (!%p83_p7)
}
   0xf   :  { %19 = dma.hbm_to_vmem [thread:$0]  %s131_s0, 128, %s17_s13, [#allocation4]  }
  0x10   :  { %87 = dma.done.wait [#allocation4], 128  }
  0x11   :  { %88 = vsyncadd [#allocation4], 4294967168  ;;  %v27_v0 = vld [vmem:[#allocation3] sm:$0xff]  ;;  %vm37_vm0 = vcmask 261120   ;;  %v41_v4 = vstv %s133_s2  ;;  %vm52_vm2 = vcmask 7168  }
  0x12   :  { %v59_v1 = vld [vmem:[%s132_s1] ss:$0 sm:$0xff] }
  0x13   :  { %v36_v2 = vmul.f32 %v59_v1, %v27_v0 }
  0x15   :  { %v38_v3 = vsel %vm37_vm0, %v36_v2, 0.0 }
  0x16   :  { %39 = vadd.xlane.f32.xlu0 %v38_v3 }
  0xa3   :  { %v40_v5 = vpop.xlane.xlu0 %39 }
  0xa4   :  { %v42_v6 = vadd.f32 %v41_v4, %v40_v5 }
  0xa6   :  { %v43_v7 = vand.u32 2147483647, %v42_v6  ;;  %vm47_vm1 = vcmp.ge.f32.partialorder %v42_v6, 0.0 }
  0xa8   :  { %v44_v8 = vsub.f32 0.0, %v43_v7 }
  0xaa   :  { %v45_v9 = vmul.f32 1.442695, %v44_v8 }
  0xac   :  { %61 = vpow2.f32 %v45_v9 }
  0xb6   :  { %v62_v10 = vpop.eup %61 }
  0xb7   :  { %v49_v11 = vadd.f32 1.0, %v62_v10  ;;  %v48_v13 = vsel %vm47_vm1, 1.0, %v62_v10 }
  0xb9   :  { %63 = vrcp.f32 %v49_v11 }
  0xc3   :  { %v64_v12 = vpop.eup %63 }
  0xc4   :  { %v51_v14 = vmul.f32 %v64_v12, %v48_v13 }
  0xc6   :  { %53 = vst.msk [vmem:[%s134_s3] sm:$0xff] %vm52_vm2, %v51_v14 }
  0xc7   :  { %58 = vsyncpa [#allocation4], 1 }

</bundles_post_ra>
